<compile_context>
chip_gen: v7x
topology: tpu7x:2x2x1
jax: 0.10.0
libtpu: 0.0.40
codegen_flags: <defaults>
</compile_context>

<pallas_src>
import jax
import jax.numpy as jnp
import numpy as np
from jax import lax
from jax.experimental import pallas as pl
from jax.experimental.pallas import tpu as pltpu


def _head_kernel(feat_ref, w_ref, patch_ref, avg_ref, emb_ref):
    """Batched head: transpose to (HW, C), global average pool, projection.

    feat_ref  : (TB, C, HW)  NCHW backbone feature map (spatial flattened)
    w_ref     : (Dp, C)      projection weight, nn.Linear layout, D padded to 128
    patch_ref : (TB, HW, C)  permuted patch features output
    avg_ref   : (TB, C)      pooled features output
    emb_ref   : (TB, Dp)     projected embedding output (lane-dense, padded)
    """
    f = feat_ref[...]                                      # (TB, C, HW)

    # In-VMEM minor-dim transpose: (TB, C, HW) -> (TB, HW, C).  Fuses the
    # NCHW -> NHWC permute with the single HBM read of the feature map.
    p = jnp.transpose(f, (0, 2, 1))                        # (TB, HW, C)
    patch_ref[...] = p.astype(patch_ref.dtype)

    # Global spatial mean == AvgPool2d(7, 1, 0) on a 7x7 map.  f32 accumulate.
    avg = jnp.mean(p.astype(jnp.float32), axis=1)          # (TB, C)
    avg_ref[...] = avg.astype(avg_ref.dtype)

    # One batched MXU matmul: (TB, C) x (Dp, C)^T -> (TB, Dp).
    emb = lax.dot_general(
        avg,
        w_ref[...].astype(jnp.float32),
        dimension_numbers=(((1,), (1,)), ((), ())),
        preferred_element_type=jnp.float32,
    )
    emb_ref[...] = emb.astype(emb_ref.dtype)


def visual_extractor_forward(patch_feats_nchw, w_proj):
    """Mirrors the ResNet branch of VisualExtractor_emebed.forward.

    patch_feats_nchw : (B, C, H, W)  backbone feature map (NCHW, like PyTorch)
    w_proj           : (D, C)        nn.Linear(C, D, bias=False).weight layout

    Returns (patch_feats, avg_feats, img_embeds) with shapes
            (B, H*W, C),  (B, C),  (B, D)
    """
    B, C, H, W = patch_feats_nchw.shape
    assert H == 7 and W == 7, "AvgPool2d(7,1,0) global-mean path assumes a 7x7 map"
    HW = H * W
    D = w_proj.shape[0]

    # Pure metadata reshape (no data movement): (B, C, H, W) -> (B, C, HW).
    feat = patch_feats_nchw.reshape(B, C, HW)

    # Lane-dense embedding output: pad D up to a multiple of 128.
    Dp = max(128, ((D + 127) // 128) * 128)
    if Dp != D:
        w_pad = jnp.zeros((Dp, C), dtype=w_proj.dtype).at[:D, :].set(w_proj)
    else:
        w_pad = w_proj

    # Batch tile: keep B whole for small batches; cap at 32 (multiple of 8) for
    # large B so double-buffered (TB, C, HW) + (TB, HW, C) f32 tiles stay well
    # inside v7x's 64 MiB VMEM at the real C=2048 shape.
    TB = B if B <= 32 else 32
    grid = (pl.cdiv(B, TB),)

    flops = 2 * B * C * Dp + B * HW * C
    bytes_accessed = (2 * B * HW * C + B * C + B * Dp + Dp * C) * feat.dtype.itemsize

    patch, avg, emb = pl.pallas_call(
        _head_kernel,
        out_shape=(
            jax.ShapeDtypeStruct((B, HW, C), feat.dtype),
            jax.ShapeDtypeStruct((B, C), feat.dtype),
            jax.ShapeDtypeStruct((B, Dp), feat.dtype),
        ),
        grid_spec=pl.GridSpec(
            grid=grid,
            in_specs=[
                pl.BlockSpec((TB, C, HW), lambda b: (b, 0, 0)),
                pl.BlockSpec((Dp, C), lambda b: (0, 0)),
            ],
            out_specs=[
                pl.BlockSpec((TB, HW, C), lambda b: (b, 0, 0)),
                pl.BlockSpec((TB, C), lambda b: (b, 0)),
                pl.BlockSpec((TB, Dp), lambda b: (b, 0)),
            ],
        ),
        compiler_params=pltpu.CompilerParams(
            dimension_semantics=("parallel",),
        ),
        cost_estimate=pl.CostEstimate(
            flops=int(flops),
            transcendentals=0,
            bytes_accessed=int(bytes_accessed),
        ),
    )(feat, w_pad)

    patch_feats = patch                       # (B, HW, C)
    avg_feats = avg                           # (B, C)
    img_embeds = emb[:, :D]                   # (B, D)  (drop lane padding)
    return patch_feats, avg_feats, img_embeds


def _reference_forward(patch_feats_nchw, w_proj):
    """Pure-JAX reference mirroring the PyTorch code exactly."""
    B, C, H, W = patch_feats_nchw.shape
    avg_feats = jnp.mean(patch_feats_nchw, axis=(2, 3)).reshape(-1, C)
    patch_feats = jnp.transpose(patch_feats_nchw.reshape(B, C, -1), (0, 2, 1))
    img_embeds = avg_feats @ w_proj.T
    return patch_feats, avg_feats, img_embeds


if __name__ == "__main__":
    key = jax.random.PRNGKey(0)
    k_feat, k_w = jax.random.split(key)

    # Small, module-consistent shapes: B=2, feat_size C=128 (stands in for 2048),
    # spatial 7x7 (canonical ResNet-50/101 output), projection dim D=64 (for 512).
    B, C, H, W, D = 2, 128, 7, 7, 64

    patch_feats_nchw = jax.random.normal(k_feat, (B, C, H, W), dtype=jnp.float32)
    # Deterministic init of nn.Linear(2048, 512, bias=False).weight analogue: (D, C)
    w_proj = jax.random.normal(k_w, (D, C), dtype=jnp.float32) * (1.0 / np.sqrt(C))

    outs = visual_extractor_forward(patch_feats_nchw, w_proj)
    outs = jax.block_until_ready(outs)
    pf, af, emb = outs

    # Correctness check vs pure-JAX reference.
    pf_r, af_r, emb_r = _reference_forward(patch_feats_nchw, w_proj)
    assert pf.shape == (B, H * W, C) and af.shape == (B, C) and emb.shape == (B, D)
    np.testing.assert_allclose(np.asarray(pf), np.asarray(pf_r), rtol=1e-5, atol=1e-5)
    np.testing.assert_allclose(np.asarray(af), np.asarray(af_r), rtol=1e-5, atol=1e-5)
    np.testing.assert_allclose(np.asarray(emb), np.asarray(emb_r), rtol=1e-4, atol=1e-4)

    print("KERNEL_OK")
</pallas_src>

<mosaic_0001>
module attributes {stable_mosaic.version = 11 : i64} {
  func.func @_head_kernel(%arg0: i32, %arg1: memref<2x128x49xf32, #tpu.memory_space<vmem>>, %arg2: memref<128x128xf32, #tpu.memory_space<vmem>>, %arg3: memref<2x49x128xf32, #tpu.memory_space<vmem>>, %arg4: memref<2x128xf32, #tpu.memory_space<vmem>>, %arg5: memref<2x128xf32, #tpu.memory_space<vmem>>) attributes {dimension_semantics = [#tpu.dimension_semantics<parallel>], iteration_bounds = array<i64: 1>, scalar_prefetch = 0 : i64, scratch_operands = 0 : i64, tpu.core_type = #tpu.core_type<tc>, window_params = [{transform_indices = @transform_0, window_bounds = array<i64: 2, 128, 49>}, {pipeline_mode = #tpu.pipeline_mode<synchronous>, transform_indices = @transform_1, window_bounds = array<i64: 128, 128>}, {transform_indices = @transform_2, window_bounds = array<i64: 2, 49, 128>}, {transform_indices = @transform_3, window_bounds = array<i64: 2, 128>}, {transform_indices = @transform_4, window_bounds = array<i64: 2, 128>}]} {
    %c0 = arith.constant 0 : index
    %c0_0 = arith.constant 0 : index
    %c0_1 = arith.constant 0 : index
    %0 = vector.load %arg1[%c0, %c0_0, %c0_1] : memref<2x128x49xf32, #tpu.memory_space<vmem>>, vector<2x128x49xf32>
    %1 = tpu.transpose %0, [0, 2, 1] : vector<2x128x49xf32> -> vector<2x49x128xf32>
    %c0_2 = arith.constant 0 : index
    %c0_3 = arith.constant 0 : index
    %c0_4 = arith.constant 0 : index
    %2 = vector.load %arg3[%c0_2, %c0_3, %c0_4] : memref<2x49x128xf32, #tpu.memory_space<vmem>>, vector<2x49x128xf32>
    tpu.vector_store %arg3[%c0_2, %c0_3, %c0_4], %1 {strides = array<i32>} : memref<2x49x128xf32, #tpu.memory_space<vmem>>, vector<2x49x128xf32>,
    %cst = arith.constant dense<0.000000e+00> : vector<2x128xf32>
    %3 = vector.multi_reduction <add>, %1, %cst [1] : vector<2x49x128xf32> to vector<2x128xf32>
    %cst_5 = arith.constant 4.900000e+01 : f32
    %4 = vector.broadcast %cst_5 : f32 to vector<2x128xf32>
    %5 = arith.divf %3, %4 : vector<2x128xf32>
    %c0_6 = arith.constant 0 : index
    %c0_7 = arith.constant 0 : index
    %6 = vector.load %arg4[%c0_6, %c0_7] : memref<2x128xf32, #tpu.memory_space<vmem>>, vector<2x128xf32>
    tpu.vector_store %arg4[%c0_6, %c0_7], %5 {strides = array<i32>} : memref<2x128xf32, #tpu.memory_space<vmem>>, vector<2x128xf32>,
    %c0_8 = arith.constant 0 : index
    %c0_9 = arith.constant 0 : index
    %7 = vector.load %arg2[%c0_8, %c0_9] : memref<128x128xf32, #tpu.memory_space<vmem>>, vector<128x128xf32>
    %cst_10 = arith.constant dense<0.000000e+00> : vector<2x128xf32>
    %8 = tpu.matmul %5, %7, %cst_10 {dimension_numbers = #tpu.dot_dimension_numbers<[1], [1], [0], [0], [0, 0, 1, 0], [], []>} : vector<2x128xf32>, vector<128x128xf32>, vector<2x128xf32> -> vector<2x128xf32>
    %c0_11 = arith.constant 0 : index
    %c0_12 = arith.constant 0 : index
    %9 = vector.load %arg5[%c0_11, %c0_12] : memref<2x128xf32, #tpu.memory_space<vmem>>, vector<2x128xf32>
    tpu.vector_store %arg5[%c0_11, %c0_12], %8 {strides = array<i32>} : memref<2x128xf32, #tpu.memory_space<vmem>>, vector<2x128xf32>,
    return
  }
  func.func @transform_0(%arg0: i32) -> (i32, i32, i32) {
    %c0_i32 = arith.constant 0 : i32
    %c0_i32_0 = arith.constant 0 : i32
    %c0_i32_1 = arith.constant 0 : i32
    return %arg0, %c0_i32, %c0_i32_0 : i32, i32, i32
  }
  func.func @transform_1(%arg0: i32) -> (i32, i32) {
    %c0_i32 = arith.constant 0 : i32
    %c0_i32_0 = arith.constant 0 : i32
    %c0_i32_1 = arith.constant 0 : i32
    return %c0_i32, %c0_i32_0 : i32, i32
  }
  func.func @transform_2(%arg0: i32) -> (i32, i32, i32) {
    %c0_i32 = arith.constant 0 : i32
    %c0_i32_0 = arith.constant 0 : i32
    %c0_i32_1 = arith.constant 0 : i32
    return %arg0, %c0_i32, %c0_i32_0 : i32, i32, i32
  }
  func.func @transform_3(%arg0: i32) -> (i32, i32) {
    %c0_i32 = arith.constant 0 : i32
    %c0_i32_0 = arith.constant 0 : i32
    return %arg0, %c0_i32 : i32, i32
  }
  func.func @transform_4(%arg0: i32) -> (i32, i32) {
    %c0_i32 = arith.constant 0 : i32
    %c0_i32_0 = arith.constant 0 : i32
    return %arg0, %c0_i32 : i32, i32
  }
}

</mosaic_0001>

<bundles_post_ra>
// kernel: tpu_custom_call.1
= control target key start
LH: loop header
LB: loop body
LE: loop exit
PB: predicated region body
PF: predicated region fallthrough
CT: control target
= control target key end

     0   :  { %10 = vsyncpa [#allocation3], 0  ;;  %v410_v4 = vmov 0.0|0.0   ;;  %s658_s0 = inlined_call_operand.vmem [shape: f32[2,128,49], index: 0, kind: input, shape index: {}]   ;;  %s659_s1 = inlined_call_operand.vmem [shape: f32[128,128], index: 1, kind: input, shape index: {}]   ;;  %s660_s2 = inlined_call_operand.vmem [shape: f32[2,49,128], index: 2, kind: output, shape index: {0}]   ;;  %s661_s3 = inlined_call_operand.hbm [shape: f32[2,128], index: 3, kind: output, shape index: {1}]   ;;  %s662_s4 = inlined_call_operand.hbm [shape: f32[2,128], index: 4, kind: output, shape index: {2}]  }
   0x1   :  { %v32_v0 = vld [vmem:[%s658_s0 + $0x80] sm:$0xff]  ;;  %v33_v2 = vld [vmem:[%s658_s0 + $0x88] sm:$0xff]  ;;  %333 = vmatprep.subr.bf16.mxu0 %v410_v4  ;;  %v34_v5 = vld [vmem:[%s658_s0 + $0x90] sm:$0xff] }
   0x2   :  { %v16_v1 = vld [vmem:[%s658_s0] sm:$0xff]  ;;  %80 = vxpose.xlu1.b32.start [1/16] (narrow) %v32_v0, 56  ;;  %v17_v3 = vld [vmem:[%s658_s0 + $0x8] sm:$0xff]  ;;  %v18_v6 = vld [vmem:[%s658_s0 + $0x10] sm:$0xff] }
   0x3   :  { %48 = vxpose.xlu0.b32.start [1/16] (narrow) %v16_v1, 56  ;;  %v35_v7 = vld [vmem:[%s658_s0 + $0x98] sm:$0xff]  ;;  %v162_v9 = vld [vmem:[%s659_s1] sm:$0xff]  ;;  %v163_v10 = vld [vmem:[%s659_s1 + $0x8] sm:$0xff] }
   0x4   :  { %v19_v8 = vld [vmem:[%s658_s0 + $0x18] sm:$0xff]  ;;  %v334_v11 = vpack.c.bf16 %v163_v10, %v162_v9  ;;  %v36_v12 = vld [vmem:[%s658_s0 + $0xa0] sm:$0xff] }
   0x5   :  { %v20_v13 = vld [vmem:[%s658_s0 + $0x20] sm:$0xff] }
   0x6   :  { %81 = vxpose.xlu1.b32.cont [2/16] (narrow) %v33_v2, 56  ;;  %335 = vmatpush3.bf16.xpose.msra.mxu0 %v334_v11 }
   0x7   :  { %49 = vxpose.xlu0.b32.cont [2/16] (narrow) %v17_v3, 56 }
   0xa   :  { %82 = vxpose.xlu1.b32.cont [3/16] (narrow) %v34_v5, 56 }
   0xb   :  { %50 = vxpose.xlu0.b32.cont [3/16] (narrow) %v18_v6, 56 }
   0xe   :  { %83 = vxpose.xlu1.b32.cont [4/16] (narrow) %v35_v7, 56 }
   0xf   :  { %51 = vxpose.xlu0.b32.cont [4/16] (narrow) %v19_v8, 56 }
  0x10   :  { %11 = vsyncpa [#allocation5], 0  ;;  %336 = vmatprep.subr.bf16.mxu0 %v410_v4  ;;  %v164_v14 = vld [vmem:[%s659_s1 + $0x10] sm:$0xff]  ;;  %v165_v15 = vld [vmem:[%s659_s1 + $0x18] sm:$0xff]  ;;  %vm411_vm0 = vmmov 0   ;;  %v412_v35 = vmov 0.0  }
  0x11   :  { %v37_v16 = vld [vmem:[%s658_s0 + $0xa8] sm:$0xff]  ;;  %v337_v18 = vpack.c.bf16 %v165_v15, %v164_v14  ;;  %v38_v19 = vld [vmem:[%s658_s0 + $0xb0] sm:$0xff]  ;;  %v166_v21 = vld [vmem:[%s659_s1 + $0x20] sm:$0xff]  ;;  %330 = vmatprep.mubr.msk.f32.mxu0 %vm411_vm0, %v412_v35  ;;  %vm131_vm1 = vcmask 1040384   ;;  %vm158_vm2 = vcmask 1041409  }
  0x12   :  { %84 = vxpose.xlu1.b32.cont [5/16] (narrow) %v36_v12, 56  ;;  %v21_v17 = vld [vmem:[%s658_s0 + $0x28] sm:$0xff]  ;;  %v22_v20 = vld [vmem:[%s658_s0 + $0x30] sm:$0xff]  ;;  %v39_v23 = vld [vmem:[%s658_s0 + $0xb8] sm:$0xff] }
  0x13   :  { %52 = vxpose.xlu0.b32.cont [5/16] (narrow) %v20_v13, 56  ;;  %338 = vmatpush3.bf16.xpose.msra.mxu0 %v337_v18  ;;  %v167_v22 = vld [vmem:[%s659_s1 + $0x28] sm:$0xff]  ;;  %v23_v24 = vld [vmem:[%s658_s0 + $0x38] sm:$0xff]  ;;  %v40_v26 = vld [vmem:[%s658_s0 + $0xc0] sm:$0xff] }
  0x14   :  { %339 = vmatprep.subr.bf16.mxu0 %v410_v4  ;;  %v340_v25 = vpack.c.bf16 %v167_v22, %v166_v21  ;;  %v24_v27 = vld [vmem:[%s658_s0 + $0x40] sm:$0xff]  ;;  %v168_v28 = vld [vmem:[%s659_s1 + $0x30] sm:$0xff]  ;;  %v169_v29 = vld [vmem:[%s659_s1 + $0x38] sm:$0xff] }
  0x15   :  { %v41_v30 = vld [vmem:[%s658_s0 + $0xc8] sm:$0xff]  ;;  %v343_v32 = vpack.c.bf16 %v169_v29, %v168_v28  ;;  %v42_v33 = vld [vmem:[%s658_s0 + $0xd0] sm:$0xff]  ;;  %v170_v36 = vld [vmem:[%s659_s1 + $0x40] sm:$0xff] }
  0x16   :  { %85 = vxpose.xlu1.b32.cont [6/16] (narrow) %v37_v16, 56  ;;  %v25_v31 = vld [vmem:[%s658_s0 + $0x48] sm:$0xff]  ;;  %v26_v34 = vld [vmem:[%s658_s0 + $0x50] sm:$0xff]  ;;  %v43_v38 = vld [vmem:[%s658_s0 + $0xd8] sm:$0xff] }
  0x17   :  { %53 = vxpose.xlu0.b32.cont [6/16] (narrow) %v21_v17, 56  ;;  %v171_v37 = vld [vmem:[%s659_s1 + $0x48] sm:$0xff]  ;;  %v27_v39 = vld [vmem:[%s658_s0 + $0x58] sm:$0xff]  ;;  %v44_v41 = vld [vmem:[%s658_s0 + $0xe0] sm:$0xff] }
  0x18   :  { %v346_v40 = vpack.c.bf16 %v171_v37, %v170_v36  ;;  %v28_v42 = vld [vmem:[%s658_s0 + $0x60] sm:$0xff]  ;;  %v172_v43 = vld [vmem:[%s659_s1 + $0x50] sm:$0xff]  ;;  %v173_v44 = vld [vmem:[%s659_s1 + $0x58] sm:$0xff] }
  0x19   :  { %v45_v45 = vld [vmem:[%s658_s0 + $0xe8] sm:$0xff]  ;;  %v349_v47 = vpack.c.bf16 %v173_v44, %v172_v43  ;;  %v46_v48 = vld [vmem:[%s658_s0 + $0xf0] sm:$0xff]  ;;  %v174_v50 = vld [vmem:[%s659_s1 + $0x60] sm:$0xff] }
  0x1a   :  { %86 = vxpose.xlu1.b32.cont [7/16] (narrow) %v38_v19, 56  ;;  %v29_v46 = vld [vmem:[%s658_s0 + $0x68] sm:$0xff]  ;;  %v30_v49 = vld [vmem:[%s658_s0 + $0x70] sm:$0xff]  ;;  %v47_v52 = vld [vmem:[%s658_s0 + $0xf8] sm:$0xff] }
  0x1b   :  { %54 = vxpose.xlu0.b32.cont [7/16] (narrow) %v22_v20, 56  ;;  %341 = vmatpush3.bf16.xpose.msra.mxu0 %v340_v25  ;;  %v175_v51 = vld [vmem:[%s659_s1 + $0x68] sm:$0xff]  ;;  %v31_v53 = vld [vmem:[%s658_s0 + $0x78] sm:$0xff]  ;;  %v176_v55 = vld [vmem:[%s659_s1 + $0x70] sm:$0xff] }
  0x1c   :  { %342 = vmatprep.subr.bf16.mxu0 %v410_v4  ;;  %v352_v54 = vpack.c.bf16 %v175_v51, %v174_v50  ;;  %v177_v56 = vld [vmem:[%s659_s1 + $0x78] sm:$0xff] }
  0x1d   :  { %v355_v57 = vpack.c.bf16 %v177_v56, %v176_v55 }
  0x1e   :  { %87 = vxpose.xlu1.b32.cont [8/16] (narrow) %v39_v23, 56 }
  0x1f   :  { %55 = vxpose.xlu0.b32.cont [8/16] (narrow) %v23_v24, 56 }
  0x22   :  { %88 = vxpose.xlu1.b32.cont [9/16] (narrow) %v40_v26, 56 }
  0x23   :  { %56 = vxpose.xlu0.b32.cont [9/16] (narrow) %v24_v27, 56  ;;  %344 = vmatpush3.bf16.xpose.msra.mxu0 %v343_v32 }
  0x24   :  { %345 = vmatprep.subr.bf16.mxu0 %v410_v4 }
  0x26   :  { %89 = vxpose.xlu1.b32.cont [10/16] (narrow) %v41_v30, 56 }
  0x27   :  { %57 = vxpose.xlu0.b32.cont [10/16] (narrow) %v25_v31, 56 }
  0x2a   :  { %90 = vxpose.xlu1.b32.cont [11/16] (narrow) %v42_v33, 56 }
  0x2b   :  { %58 = vxpose.xlu0.b32.cont [11/16] (narrow) %v26_v34, 56  ;;  %347 = vmatpush3.bf16.xpose.msra.mxu0 %v346_v40 }
  0x2c   :  { %348 = vmatprep.subr.bf16.mxu0 %v410_v4 }
  0x2e   :  { %91 = vxpose.xlu1.b32.cont [12/16] (narrow) %v43_v38, 56 }
  0x2f   :  { %59 = vxpose.xlu0.b32.cont [12/16] (narrow) %v27_v39, 56 }
  0x32   :  { %92 = vxpose.xlu1.b32.cont [13/16] (narrow) %v44_v41, 56 }
  0x33   :  { %60 = vxpose.xlu0.b32.cont [13/16] (narrow) %v28_v42, 56  ;;  %350 = vmatpush3.bf16.xpose.msra.mxu0 %v349_v47 }
  0x34   :  { %351 = vmatprep.subr.bf16.mxu0 %v410_v4 }
  0x36   :  { %93 = vxpose.xlu1.b32.cont [14/16] (narrow) %v45_v45, 56 }
  0x37   :  { %61 = vxpose.xlu0.b32.cont [14/16] (narrow) %v29_v46, 56 }
  0x3a   :  { %94 = vxpose.xlu1.b32.cont [15/16] (narrow) %v46_v48, 56 }
  0x3b   :  { %62 = vxpose.xlu0.b32.cont [15/16] (narrow) %v30_v49, 56  ;;  %353 = vmatpush3.bf16.xpose.msra.mxu0 %v352_v54 }
  0x3c   :  { %354 = vmatprep.subr.bf16.mxu0 %v410_v4 }
  0x3e   :  { %95 = vxpose.xlu1.b32.end [16/16] (narrow) %v47_v52, 56 }
  0x3f   :  { %63 = vxpose.xlu0.b32.end [16/16] (narrow) %v31_v53, 56 }
  0x43   :  { %356 = vmatpush3.bf16.xpose.msra.mxu0 %v355_v57 }
  0x82   :  { %v96_v58 = vpop.trf.xlu1 }
  0x83   :  { %v64_v59 = vpop.trf.xlu0  ;;  %119 = vst [vmem:[%s660_s2 + $0x38] sm:$0xff] %v96_v58 }
  0x84   :  { %112 = vst [vmem:[%s660_s2] sm:$0xff] %v64_v59 }
  0x86   :  { %v97_v60 = vpop.trf.xlu1 }
  0x87   :  { %v65_v61 = vpop.trf.xlu0  ;;  %120 = vst [vmem:[%s660_s2 + $0x40] sm:$0xff] %v97_v60  ;;  %v140_v2 = vadd.f32 %v97_v60, %v96_v58 }
  0x88   :  { %113 = vst [vmem:[%s660_s2 + $0x8] sm:$0xff] %v65_v61  ;;  %v126_v3 = vadd.f32 %v65_v61, %v64_v59 }
  0x8a   :  { %v98_v62 = vpop.trf.xlu1 }
  0x8b   :  { %v66_v63 = vpop.trf.xlu0  ;;  %121 = vst [vmem:[%s660_s2 + $0x48] sm:$0xff] %v98_v62  ;;  %v141_v6 = vadd.f32 %v140_v2, %v98_v62 }
  0x8c   :  { %114 = vst [vmem:[%s660_s2 + $0x10] sm:$0xff] %v66_v63  ;;  %v127_v7 = vadd.f32 %v126_v3, %v66_v63 }
  0x8e   :  { %v99_v0 = vpop.trf.xlu1 }
  0x8f   :  { %v67_v1 = vpop.trf.xlu0  ;;  %122 = vst [vmem:[%s660_s2 + $0x50] sm:$0xff] %v99_v0  ;;  %v142_v8 = vadd.f32 %v141_v6, %v99_v0 }
  0x90   :  { %115 = vst [vmem:[%s660_s2 + $0x18] sm:$0xff] %v67_v1  ;;  %v128_v9 = vadd.f32 %v127_v7, %v67_v1 }
  0x92   :  { %v100_v4 = vpop.trf.xlu1 }
  0x93   :  { %v68_v5 = vpop.trf.xlu0  ;;  %123 = vst [vmem:[%s660_s2 + $0x58] sm:$0xff] %v100_v4  ;;  %v143_v12 = vadd.f32 %v142_v8, %v100_v4 }
  0x94   :  { %116 = vst [vmem:[%s660_s2 + $0x20] sm:$0xff] %v68_v5  ;;  %v129_v13 = vadd.f32 %v128_v9, %v68_v5 }
  0x96   :  { %v101_v10 = vpop.trf.xlu1 }
  0x97   :  { %v69_v11 = vpop.trf.xlu0  ;;  %124 = vst [vmem:[%s660_s2 + $0x60] sm:$0xff] %v101_v10  ;;  %v144_v14 = vadd.f32 %v143_v12, %v101_v10 }
  0x98   :  { %117 = vst [vmem:[%s660_s2 + $0x28] sm:$0xff] %v69_v11  ;;  %v130_v15 = vadd.f32 %v129_v13, %v69_v11 }
  0x9a   :  { %v102_v16 = vpop.trf.xlu1 }
  0x9b   :  { %v70_v17 = vpop.trf.xlu0  ;;  %125 = vst [vmem:[%s660_s2 + $0x68] sm:$0x1] %v102_v16  ;;  %v145_v18 = vsel %vm131_vm1, %v102_v16, 0.0 }
  0x9c   :  { %118 = vst [vmem:[%s660_s2 + $0x30] sm:$0x1] %v70_v17  ;;  %v132_v19 = vsel %vm131_vm1, %v70_v17, 0.0  ;;  %v146_v20 = vadd.f32 %v145_v18, %v144_v14  ;;  %s413_s2 = smov [#allocation2]  }
  0x9d   :  { %v133_v21 = vadd.f32 %v132_v19, %v130_v15  ;;  %s257_s7 = sshll.u32 %s413_s2, 4  ;;  %s258_s7 = int_to_ptr.vmem [resolvable:$true] %s257_s7 }
  0x9e   :  { %v147_v22 = vrot.slane %v146_v20, 4  ;;  %s362_s0 = scalar_lea.vmem %s258_s7, 32  ;;  %p367_p1 = scmp.lt.s32.totalorder %s258_s7, %s258_s7 }
  0x9f   :  { %v134_v23 = vrot.slane %v133_v21, 4  ;;  %p363_p0 = scmp.ne.s32.totalorder %s258_s7, %s362_s0  ;;  %p368_p2 = scmp.lt.s32.totalorder %s362_s0, %s362_s0 }
  0xa0   :  { %v148_v24 = vadd.f32 %v147_v22, %v146_v20 }
  0xa1   :  { %v135_v25 = vadd.f32 %v134_v23, %v133_v21  ;;  %p369_p3 = por %p368_p2, %p367_p1 }
  0xa2   :  { %v149_v26 = vrot.slane %v148_v24, 2 }
  0xa3   :  { %v136_v27 = vrot.slane %v135_v25, 2  ;;  %p370_p4 = pnand %p369_p3, %p363_p0 }
  0xa4   :  { %v150_v28 = vadd.f32 %v149_v26, %v148_v24 }
  0xa5   :  { %v137_v29 = vadd.f32 %v136_v27, %v135_v25 }
  0xa6   :  { %v151_v30 = vrot.slane %v150_v28, 1 }
  0xa7   :  { %v138_v31 = vrot.slane %v137_v29, 1 }
  0xa8   :  { %v152_v33 = vadd.f32 %v151_v30, %v150_v28 }
  0xa9   :  { %v139_v32 = vadd.f32 %v138_v31, %v137_v29 }
  0xaa   :  { %v155_v35 = vmul.f32 0.020408163, %v152_v33 }
  0xab   :  { %v154_v34 = vmul.f32 0.020408163, %v139_v32 }
  0xad   :  { %v159_v36 = vsel %vm158_vm2, %v155_v35, %v154_v34 }
  0xae   :  { %331 = vmatmul.mubr.f32.vlgmr.msra.gmra.mrb[0].mxu0 %v159_v36  ;;  %161 = vst [vmem:[#allocation2] sm:$0x3] %v159_v36 }
  0xaf   :  { %373 = shalt.err (!%p370_p4)
}
  0xb0   :  { %s374_s10 = scalar_lea.hbm %s661_s3, 32 }
  0xb1   :  { %p375_p5 = scmp.ne.s32.totalorder %s661_s3, %s374_s10  ;;  %p378_p6 = scmp.lt.u32.totalorder %s374_s10, %s661_s3 }
  0xb3   :  { %p380_p7 = pnand %p378_p6, %p375_p5 }
  0xb5   :  { %383 = shalt.err (!%p380_p7)
}
  0xb6   :  { %260 = dma.vmem_to_hbm [thread:$0]  %s258_s7, 32, %s661_s3, [#allocation3]  }
  0xb7   :  { %s414_s16 = smov [#allocation4]  }
  0xb8   :  { %s267_s17 = sshll.u32 %s414_s16, 4  ;;  %s268_s17 = int_to_ptr.vmem [resolvable:$true] %s267_s17 }
  0xb9   :  { %s384_s18 = scalar_lea.vmem %s268_s17, 32  ;;  %p389_p9 = scmp.lt.s32.totalorder %s268_s17, %s268_s17 }
  0xba   :  { %p385_p8 = scmp.ne.s32.totalorder %s268_s17, %s384_s18  ;;  %p390_p10 = scmp.lt.s32.totalorder %s384_s18, %s384_s18 }
  0xbc   :  { %p391_p11 = por %p390_p10, %p389_p9 }
  0xbe   :  { %p392_p12 = pnand %p391_p11, %p385_p8 }
 0x181   :  { %v244_v37 = vpop.f32.mrb[0].mxu0 }
 0x182   :  { %248 = vst [vmem:[#allocation4] sm:$0x3] %v244_v37  ;;  %v332_v38 = vpop.f32.mrb[1].mxu0 }
 0x183   :  { %395 = shalt.err (!%p392_p12)
}
 0x184   :  { %s396_s21 = scalar_lea.hbm %s662_s4, 32 }
 0x185   :  { %p397_p13 = scmp.ne.s32.totalorder %s662_s4, %s396_s21  ;;  %p400_p0 = scmp.lt.u32.totalorder %s396_s21, %s662_s4 }
 0x187   :  { %p402_p1 = pnand %p400_p0, %p397_p13 }
 0x189   :  { %405 = shalt.err (!%p402_p1)
}
 0x18a   :  { %270 = dma.vmem_to_hbm [thread:$0]  %s268_s17, 32, %s662_s4, [#allocation5]  }
 0x18b   :  { %406 = dma.done.wait [#allocation3], 32  }
 0x18c   :  { %407 = vsyncadd [#allocation3], 4294967264 }
 0x18d   :  { %408 = dma.done.wait [#allocation5], 32  }
 0x18e   :  { %409 = vsyncadd [#allocation5], 4294967264 }
 0x18f   :  { %279 = vsyncpa [#allocation3], 1 }
 0x190   :  { %280 = vsyncpa [#allocation5], 1 }

</bundles_post_ra>
